<compile_context>
chip_gen: v7x
topology: tpu7x:2x2x1
jax: 0.10.0
libtpu: 0.0.40
codegen_flags: <defaults>
</compile_context>

<pallas_src>
import functools

import jax
import jax.numpy as jnp
from jax.experimental import pallas as pl
from jax.experimental.pallas import tpu as pltpu

LANES = 128        # TPU lane width
SUBLANES = 8       # f32 sublane count (block second-to-last dim granularity)
TILE_R_MAX = 1024  # rows per grid step: 1024*128*4B = 512 KiB per plane/buffer


def _complex_dropout_kernel(threshold, scale, bits_ref, x_ref, o_ref):
    # bits_ref: (TILE_R, 128) int32, i.i.d. uniform over [0, 2**31)
    # x_ref/o_ref: (2, TILE_R, 128) float32 -> [real plane, imag plane]
    keep = bits_ref[...] >= jnp.int32(threshold)                 # P(keep) = 1 - p
    mask = jnp.where(keep, jnp.float32(scale), jnp.float32(0.0))
    o_ref[...] = x_ref[...] * mask[None, :, :]                   # shared mask re/im


def complex_dropout(x, p=0.5, key=None, training=True):
    """JAX/Pallas equivalent of ComplexDropout.forward.

    x: complex64 array of any shape (e.g. NCHW). Returns complex64 of the same
    shape. Eval mode (training=False) and p == 0 are identity; p >= 1 zeroes
    the output (matching torch dropout), avoiding the 1/(1-p) singularity.
    """
    if (not training) or p <= 0.0:
        return x
    if p >= 1.0:
        return jnp.zeros_like(x)
    if key is None:
        key = jax.random.PRNGKey(0)

    orig_shape = x.shape
    total = int(x.size)                      # number of complex elements

    # Row geometry: lane-dense (rows, 128) with rows a multiple of 8, and a
    # multiple of the tile size when the array spans more than one tile.
    rows = -(-total // LANES)
    rows = -(-rows // SUBLANES) * SUBLANES
    if rows > TILE_R_MAX:
        tile_r = TILE_R_MAX
        rows = -(-rows // tile_r) * tile_r
    else:
        tile_r = rows
    grid_r = rows // tile_r
    padded_total = rows * LANES
    pad = padded_total - total

    # Stack real/imag into one float32 array: one DMA stream in, one out.
    planes = jnp.stack([jnp.real(x).reshape(-1), jnp.imag(x).reshape(-1)])
    planes = planes.astype(jnp.float32)
    if pad:
        planes = jnp.pad(planes, ((0, 0), (0, pad)))
    planes = planes.reshape(2, rows, LANES)

    # 31-bit uniform random integers, one per complex element.
    bits = jax.random.bits(key, (rows, LANES), dtype=jnp.uint32)
    bits = (bits >> jnp.uint32(1)).astype(jnp.int32)

    threshold = min(int(round(float(p) * (1 << 31))), (1 << 31) - 1)
    scale = 1.0 / (1.0 - float(p))
    kernel = functools.partial(_complex_dropout_kernel, threshold, scale)

    out = pl.pallas_call(
        kernel,
        out_shape=jax.ShapeDtypeStruct((2, rows, LANES), jnp.float32),
        grid=(grid_r,),
        in_specs=[
            pl.BlockSpec((tile_r, LANES), lambda i: (i, 0)),        # random bits
            pl.BlockSpec((2, tile_r, LANES), lambda i: (0, i, 0)),  # re/im planes
        ],
        out_specs=pl.BlockSpec((2, tile_r, LANES), lambda i: (0, i, 0)),
        compiler_params=pltpu.CompilerParams(
            dimension_semantics=("parallel",),
            vmem_limit_bytes=32 * 1024 * 1024,
        ),
    )(bits, planes)

    out = out.reshape(2, padded_total)[:, :total]
    return jax.lax.complex(out[0].reshape(orig_shape),
                           out[1].reshape(orig_shape))


class ComplexDropout:
    """Thin stateful wrapper mirroring the PyTorch module interface."""

    def __init__(self, p=0.5):
        self.p = p
        self.training = True

    def __call__(self, x, key=None):
        if self.training:
            return complex_dropout(x, self.p, key=key, training=True)
        return x


if __name__ == "__main__":
    key = jax.random.PRNGKey(0)
    kr, ki, kd = jax.random.split(key, 3)
    shape = (2, 4, 16, 16)  # small NCHW complex input
    xr = jax.random.normal(kr, shape, dtype=jnp.float32)
    xi = jax.random.normal(ki, shape, dtype=jnp.float32)
    x = jax.lax.complex(xr, xi)

    layer = ComplexDropout(p=0.5)

    # training mode: dropout with one mask shared by real/imag parts
    layer.training = True
    y = layer(x, key=kd)
    jax.block_until_ready(y)

    zr = (jnp.real(y) == 0.0)
    zi = (jnp.imag(y) == 0.0)
    assert bool(jnp.all(zr == zi))                    # zeros coincide (shared mask)
    kept = ~zr
    frac = float(jnp.mean(kept.astype(jnp.float32)))
    assert 0.35 < frac < 0.65                         # keep-prob ~ 1 - p
    assert bool(jnp.allclose(jnp.real(y)[kept], 2.0 * jnp.real(x)[kept],
                             rtol=1e-6, atol=1e-6))   # inverted-dropout scaling
    assert bool(jnp.allclose(jnp.imag(y)[kept], 2.0 * jnp.imag(x)[kept],
                             rtol=1e-6, atol=1e-6))

    # p = 1 zeroes everything; eval mode is identity
    assert bool(jnp.all(complex_dropout(x, 1.0, key=kd) == 0))
    layer.training = False
    y_eval = layer(x)
    jax.block_until_ready(y_eval)
    assert bool(jnp.all(y_eval == x))

    print("KERNEL_OK")
</pallas_src>

<mosaic_0001>
module attributes {stable_mosaic.version = 11 : i64} {
  func.func @_complex_dropout_kernel(%arg0: i32, %arg1: memref<16x128xi32, #tpu.memory_space<vmem>>, %arg2: memref<2x16x128xf32, #tpu.memory_space<vmem>>, %arg3: memref<2x16x128xf32, #tpu.memory_space<vmem>>) attributes {dimension_semantics = [#tpu.dimension_semantics<parallel>], iteration_bounds = array<i64: 1>, scalar_prefetch = 0 : i64, scratch_operands = 0 : i64, tpu.core_type = #tpu.core_type<tc>, window_params = [{transform_indices = @transform_0, window_bounds = array<i64: 16, 128>}, {transform_indices = @transform_1, window_bounds = array<i64: 2, 16, 128>}, {transform_indices = @transform_2, window_bounds = array<i64: 2, 16, 128>}]} {
    %c0 = arith.constant 0 : index
    %c0_0 = arith.constant 0 : index
    %0 = vector.load %arg1[%c0, %c0_0] : memref<16x128xi32, #tpu.memory_space<vmem>>, vector<16x128xi32>
    %c1073741824_i32 = arith.constant 1073741824 : i32
    %1 = vector.broadcast %c1073741824_i32 : i32 to vector<16x128xi32>
    %2 = arith.cmpi sge, %0, %1 : vector<16x128xi32>
    %cst = arith.constant 2.000000e+00 : f32
    %cst_1 = arith.constant 0.000000e+00 : f32
    %3 = vector.broadcast %cst : f32 to vector<16x128xf32>
    %4 = vector.broadcast %cst_1 : f32 to vector<16x128xf32>
    %5 = arith.select %2, %3, %4 : vector<16x128xi1>, vector<16x128xf32>
    %c0_2 = arith.constant 0 : index
    %c0_3 = arith.constant 0 : index
    %c0_4 = arith.constant 0 : index
    %6 = vector.load %arg2[%c0_2, %c0_3, %c0_4] : memref<2x16x128xf32, #tpu.memory_space<vmem>>, vector<2x16x128xf32>
    %7 = vector.shape_cast %5 : vector<16x128xf32> to vector<1x16x128xf32>
    %8 = vector.broadcast %7 : vector<1x16x128xf32> to vector<2x16x128xf32>
    %9 = arith.mulf %6, %8 : vector<2x16x128xf32>
    %c0_5 = arith.constant 0 : index
    %c0_6 = arith.constant 0 : index
    %c0_7 = arith.constant 0 : index
    %10 = vector.load %arg3[%c0_5, %c0_6, %c0_7] : memref<2x16x128xf32, #tpu.memory_space<vmem>>, vector<2x16x128xf32>
    tpu.vector_store %arg3[%c0_5, %c0_6, %c0_7], %9 {strides = array<i32>} : memref<2x16x128xf32, #tpu.memory_space<vmem>>, vector<2x16x128xf32>,
    return
  }
  func.func @transform_0(%arg0: i32) -> (i32, i32) {
    %c0_i32 = arith.constant 0 : i32
    %c0_i32_0 = arith.constant 0 : i32
    return %arg0, %c0_i32 : i32, i32
  }
  func.func @transform_1(%arg0: i32) -> (i32, i32, i32) {
    %c0_i32 = arith.constant 0 : i32
    %c0_i32_0 = arith.constant 0 : i32
    %c0_i32_1 = arith.constant 0 : i32
    return %c0_i32, %arg0, %c0_i32_0 : i32, i32, i32
  }
  func.func @transform_2(%arg0: i32) -> (i32, i32, i32) {
    %c0_i32 = arith.constant 0 : i32
    %c0_i32_0 = arith.constant 0 : i32
    %c0_i32_1 = arith.constant 0 : i32
    return %c0_i32, %arg0, %c0_i32_0 : i32, i32, i32
  }
}

</mosaic_0001>

<bundles_post_ra>
// kernel: tpu_custom_call.1
= control target key start
LH: loop header
LB: loop body
LE: loop exit
PB: predicated region body
PF: predicated region fallthrough
CT: control target
= control target key end

     0   :  { %7 = vsyncpa [#allocation3], 0  ;;  %s220_s0 = inlined_call_operand.hbm [shape: s32[16,128], index: 0, kind: input, shape index: {}]   ;;  %s221_s1 = inlined_call_operand.hbm [shape: f32[2,16,128], index: 1, kind: input, shape index: {}]   ;;  %s222_s2 = inlined_call_operand.hbm [shape: f32[2,16,128], index: 2, kind: output, shape index: {}]  }
   0x1   :  { %8 = vsyncpa [#allocation6], 0 }
   0x2   :  { %9 = vsyncpa [#allocation4], 0  ;;  %s154_s9 = smov [#allocation2]   ;;  %s82_s13 = scalar_lea.hbm %s220_s0, 256 }
   0x3   :  { %s15_s10 = sshll.u32 %s154_s9, 4  ;;  %p83_p0 = scmp.ne.s32.totalorder %s220_s0, %s82_s13  ;;  %s16_s10 = int_to_ptr.vmem [resolvable:$true] %s15_s10 }
   0x4   :  { %p86_p1 = scmp.lt.u32.totalorder %s82_s13, %s220_s0 }
   0x6   :  { %p88_p2 = pnand %p86_p1, %p83_p0 }
   0x8   :  { %91 = shalt.err (!%p88_p2)
}
   0x9   :  { %s92_s18 = scalar_lea.vmem %s16_s10, 256  ;;  %p97_p4 = scmp.lt.s32.totalorder %s16_s10, %s16_s10 }
   0xa   :  { %p93_p3 = scmp.ne.s32.totalorder %s16_s10, %s92_s18  ;;  %p98_p5 = scmp.lt.s32.totalorder %s92_s18, %s92_s18 }
   0xc   :  { %p99_p6 = por %p98_p5, %p97_p4 }
   0xe   :  { %p100_p7 = pnand %p99_p6, %p93_p3 }
  0x10   :  { %103 = shalt.err (!%p100_p7)
}
  0x11   :  { %s155_s19 = smov 128   ;;  %s156_s20 = smov 8  }
  0x12   :  { %21 = dma.hbm_to_vmem [thread:$0]  %s220_s0, 256, %s16_s10, [#allocation3], %s155_s19, %s155_s19, %s156_s20  }
  0x13   :  { %s157_s23 = smov [#allocation5]   ;;  %s104_s27 = scalar_lea.hbm %s221_s1, 512 }
  0x14   :  { %s27_s24 = sshll.u32 %s157_s23, 4  ;;  %p105_p8 = scmp.ne.s32.totalorder %s221_s1, %s104_s27  ;;  %s28_s24 = int_to_ptr.vmem [resolvable:$true] %s27_s24 }
  0x15   :  { %p108_p9 = scmp.lt.u32.totalorder %s104_s27, %s221_s1 }
  0x17   :  { %p110_p10 = pnand %p108_p9, %p105_p8 }
  0x19   :  { %113 = shalt.err (!%p110_p10)
}
  0x1a   :  { %s114_s4 = scalar_lea.vmem %s28_s24, 512  ;;  %p119_p12 = scmp.lt.s32.totalorder %s28_s24, %s28_s24 }
  0x1b   :  { %p115_p11 = scmp.ne.s32.totalorder %s28_s24, %s114_s4  ;;  %p120_p13 = scmp.lt.s32.totalorder %s114_s4, %s114_s4 }
  0x1d   :  { %p121_p0 = por %p120_p13, %p119_p12 }
  0x1f   :  { %p122_p1 = pnand %p121_p0, %p115_p11 }
  0x21   :  { %125 = shalt.err (!%p122_p1)
}
  0x22   :  { %33 = dma.hbm_to_vmem [thread:$0]  %s221_s1, 512, %s28_s24, [#allocation6], %s155_s19, %s155_s19, %s156_s20  }
  0x23   :  { %148 = dma.done.wait [#allocation3], 256  }
  0x24   :  { %149 = vsyncadd [#allocation3], 4294967040 }
  0x25   :  { %150 = dma.done.wait [#allocation6], 512  }
  0x26   :  { %151 = vsyncadd [#allocation6], 4294966784  ;;  %v40_v0 = vld [vmem:[#allocation2] sm:$0xff]  ;;  %v46_v1 = vld [vmem:[#allocation5] sm:$0xff]  ;;  %s158_s6 = smov [#allocation7]   ;;  %v159_v6 = vmov 0.0  }
  0x27   :  { %v41_v2 = vld [vmem:[#allocation2 + $0x8] sm:$0xff]  ;;  %s63_s7 = sshll.u32 %s158_s6, 4  ;;  %vm42_vm0 = vcmp.ge.s32.totalorder %v40_v0, 1073741824  ;;  %v47_v3 = vld [vmem:[#allocation5 + $0x8] sm:$0xff]  ;;  %v48_v4 = vld [vmem:[#allocation5 + $0x10] sm:$0xff]  ;;  %s64_s7 = int_to_ptr.vmem [resolvable:$true] %s63_s7 }
  0x28   :  { %vm43_vm1 = vcmp.ge.s32.totalorder %v41_v2, 1073741824  ;;  %v49_v5 = vld [vmem:[#allocation5 + $0x18] sm:$0xff]  ;;  %v44_v7 = vsel %vm42_vm0, 2.0, %v159_v6  ;;  %s126_s1 = scalar_lea.vmem %s64_s7, 512  ;;  %p131_p3 = scmp.lt.s32.totalorder %s64_s7, %s64_s7 }
  0x29   :  { %v45_v8 = vsel %vm43_vm1, 2.0, %v159_v6  ;;  %v50_v9 = vmul.f32 %v46_v1, %v44_v7  ;;  %v52_v11 = vmul.f32 %v48_v4, %v44_v7  ;;  %p127_p2 = scmp.ne.s32.totalorder %s64_s7, %s126_s1  ;;  %p132_p4 = scmp.lt.s32.totalorder %s126_s1, %s126_s1 }
  0x2a   :  { %v51_v10 = vmul.f32 %v47_v3, %v45_v8  ;;  %v53_v12 = vmul.f32 %v49_v5, %v45_v8 }
  0x2b   :  { %54 = vst [vmem:[#allocation7] sm:$0xff] %v50_v9  ;;  %56 = vst [vmem:[#allocation7 + $0x10] sm:$0xff] %v52_v11  ;;  %p133_p5 = por %p132_p4, %p131_p3 }
  0x2c   :  { %55 = vst [vmem:[#allocation7 + $0x8] sm:$0xff] %v51_v10  ;;  %57 = vst [vmem:[#allocation7 + $0x18] sm:$0xff] %v53_v12 }
  0x2d   :  { %p134_p6 = pnand %p133_p5, %p127_p2 }
  0x2f   :  { %137 = shalt.err (!%p134_p6)
}
  0x30   :  { %s138_s10 = scalar_lea.hbm %s222_s2, 512 }
  0x31   :  { %p139_p7 = scmp.ne.s32.totalorder %s222_s2, %s138_s10  ;;  %p142_p8 = scmp.lt.u32.totalorder %s138_s10, %s222_s2 }
  0x33   :  { %p144_p9 = pnand %p142_p8, %p139_p7 }
  0x35   :  { %147 = shalt.err (!%p144_p9)
}
  0x36   :  { %69 = dma.vmem_to_hbm [thread:$0]  %s64_s7, 512, %s222_s2, [#allocation4], %s155_s19, %s155_s19, %s156_s20  }
  0x37   :  { %152 = dma.done.wait [#allocation4], 512  }
  0x38   :  { %153 = vsyncadd [#allocation4], 4294966784 }
  0x39   :  { %73 = vsyncpa [#allocation3], 1 }
  0x3a   :  { %74 = vsyncpa [#allocation6], 1 }
  0x3b   :  { %75 = vsyncpa [#allocation4], 1 }

</bundles_post_ra>
